<compile_context>
chip_gen: v7x
topology: tpu7x:2x2x1
jax: 0.10.0
libtpu: 0.0.40
codegen_flags: <defaults>
</compile_context>

<pallas_src>
import functools

import jax
import jax.numpy as jnp
from jax.experimental import pallas as pl
from jax.experimental.pallas import tpu as pltpu


DIM_MNIST = 28 * 28          # 784
H1 = 512
H2 = 128


def _round_up(x, m):
    return ((x + m - 1) // m) * m


def _pick_tile(batch):
    """Batch-tile rows per grid step."""
    if batch <= 256:
        # Single full-batch tile: block dim == full array dim is always legal,
        # no padding or copies required.
        return batch
    # Larger batches: tiles of up to 1024 rows (amortizes the ~0.35us per-step
    # pipeline overhead on v6e), always >= 2 grid steps so both v7x
    # TensorCores get work, rounded to a multiple of 128 rows for the MXU and
    # so partial boundary blocks stay sublane-aligned.
    return min(1024, _round_up((batch + 1) // 2, 128))


def _enc_mnist_kernel(x_ref, w1_ref, b1_ref, w2_ref, b2_ref, wh_ref, bh_ref,
                      out_ref):
    # x_ref: (TM, 784) activation tile (any float dtype); weights bf16,
    # biases f32.  Cast activations to bf16 in-kernel (halves HBM traffic if
    # the producer already emits bf16; exact MXU path either way).
    x = x_ref[...].astype(jnp.bfloat16)

    # Linear(784 -> 512) + ReLU
    h1 = jnp.dot(x, w1_ref[...], preferred_element_type=jnp.float32) + b1_ref[...]
    h1 = jnp.maximum(h1, 0.0).astype(jnp.bfloat16)

    # Linear(512 -> 128) + ReLU
    h2 = jnp.dot(h1, w2_ref[...], preferred_element_type=jnp.float32) + b2_ref[...]
    h2 = jnp.maximum(h2, 0.0).astype(jnp.bfloat16)

    # Fused heads: Linear(128 -> HEAD_PAD); first 2*latent lanes = [mu | logvar]
    out = jnp.dot(h2, wh_ref[...], preferred_element_type=jnp.float32) + bh_ref[...]
    out_ref[...] = out.astype(out_ref.dtype)


def prepare_params(params):
    """Pack torch-style f32 params into kernel layout (bf16 weights, fused head)."""
    w1, b1, w2, b2, wmu, bmu, wvar, bvar = params
    latent_dim = wmu.shape[1]
    head_pad = max(128, _round_up(2 * latent_dim, 128))

    # Fuse mu / logvar heads and pad output lanes to a full 128 multiple
    # (lane-dense, unmasked store).
    wh = jnp.zeros((H2, head_pad), jnp.float32)
    wh = wh.at[:, :latent_dim].set(wmu).at[:, latent_dim:2 * latent_dim].set(wvar)
    bh = jnp.zeros((1, head_pad), jnp.float32)
    bh = bh.at[:, :latent_dim].set(bmu[0]).at[:, latent_dim:2 * latent_dim].set(bvar[0])

    prepared = (
        w1.astype(jnp.bfloat16), b1.astype(jnp.float32),
        w2.astype(jnp.bfloat16), b2.astype(jnp.float32),
        wh.astype(jnp.bfloat16), bh.astype(jnp.float32),
    )
    return prepared, latent_dim, head_pad


@functools.partial(jax.jit, static_argnames=("latent_dim", "head_pad", "tm"))
def _enc_mnist_call(x2d, prepared, latent_dim, head_pad, tm):
    w1, b1, w2, b2, wh, bh = prepared
    B = x2d.shape[0]
    grid = (pl.cdiv(B, tm),)

    pinned = lambda shape: pl.BlockSpec(shape, lambda i: (0, 0))

    flops = 2 * B * (DIM_MNIST * H1 + H1 * H2 + H2 * head_pad)
    bytes_accessed = (
        B * DIM_MNIST * x2d.dtype.itemsize          # activations in
        + B * head_pad * 4                          # fused head out (f32)
        + sum(p.size * p.dtype.itemsize for p in prepared)  # resident params
    )
    cost = pl.CostEstimate(flops=flops, transcendentals=0,
                           bytes_accessed=bytes_accessed)

    out = pl.pallas_call(
        _enc_mnist_kernel,
        out_shape=jax.ShapeDtypeStruct((B, head_pad), jnp.float32),
        grid=grid,
        in_specs=[
            pl.BlockSpec((tm, DIM_MNIST), lambda i: (i, 0)),  # x batch tile
            pinned((DIM_MNIST, H1)), pinned((1, H1)),         # layer 1 (resident)
            pinned((H1, H2)),        pinned((1, H2)),         # layer 2 (resident)
            pinned((H2, head_pad)),  pinned((1, head_pad)),   # fused head (resident)
        ],
        out_specs=pl.BlockSpec((tm, head_pad), lambda i: (i, 0)),
        compiler_params=pltpu.CompilerParams(
            dimension_semantics=("parallel",),
            vmem_limit_bytes=32 << 20,
        ),
        cost_estimate=cost,
    )(x2d, w1, b1, w2, b2, wh, bh)

    mu = out[:, :latent_dim]
    log_var = out[:, latent_dim:2 * latent_dim]
    return mu, log_var


def enc_mnist_forward(x, prepared_bundle):
    """x: (B, 1, 28, 28) or (B, 784), any float dtype. Returns (mu, log_var)."""
    prepared, latent_dim, head_pad = prepared_bundle
    x2d = x.reshape(-1, DIM_MNIST)      # no cast, no pad: kernel casts in-VMEM
    tm = _pick_tile(x2d.shape[0])
    return _enc_mnist_call(x2d, prepared, latent_dim, head_pad, tm)


def init_params(key, latent_dim):
    """Deterministic synthetic parameters; Linear weights stored as (in, out)."""
    ks = jax.random.split(key, 8)

    def linear(kw, kb, fan_in, fan_out):
        # Mimic torch's default uniform(-1/sqrt(fan_in), 1/sqrt(fan_in)) init.
        bound = 1.0 / jnp.sqrt(jnp.float32(fan_in))
        w = jax.random.uniform(kw, (fan_in, fan_out), jnp.float32, -bound, bound)
        b = jax.random.uniform(kb, (1, fan_out), jnp.float32, -bound, bound)
        return w, b

    w1, b1 = linear(ks[0], ks[1], DIM_MNIST, H1)
    w2, b2 = linear(ks[2], ks[3], H1, H2)
    wmu, bmu = linear(ks[4], ks[5], H2, latent_dim)
    wvar, bvar = linear(ks[6], ks[7], H2, latent_dim)
    return (w1, b1, w2, b2, wmu, bmu, wvar, bvar)


def _reference(x, prepared_bundle):
    """f32 reference using the same bf16-rounded weights/activations."""
    prepared, latent_dim, _ = prepared_bundle
    w1, b1, w2, b2, wh, bh = [p.astype(jnp.float32) for p in prepared]
    bf16 = lambda a: a.astype(jnp.bfloat16).astype(jnp.float32)
    x2d = x.reshape(-1, DIM_MNIST).astype(jnp.float32)
    h1 = jnp.maximum(bf16(x2d) @ w1 + b1, 0.0)
    h2 = jnp.maximum(bf16(h1) @ w2 + b2, 0.0)
    out = bf16(h2) @ wh + bh
    return out[:, :latent_dim], out[:, latent_dim:2 * latent_dim]


if __name__ == "__main__":
    key = jax.random.PRNGKey(0)
    k_x, k_p = jax.random.split(key)

    batch = 2
    latent_dim = 16
    # MNIST-style NCHW input (B, 1, 28, 28)
    x = jax.random.uniform(k_x, (batch, 1, 28, 28), jnp.float32)

    params = init_params(k_p, latent_dim)
    prepared_bundle = prepare_params(params)

    mu, log_var = enc_mnist_forward(x, prepared_bundle)
    jax.block_until_ready((mu, log_var))

    mu_ref, lv_ref = _reference(x, prepared_bundle)
    assert mu.shape == (batch, latent_dim) and log_var.shape == (batch, latent_dim)
    # bf16 matmul operands with f32 accumulation -> small rounding vs f32 ref.
    assert jnp.allclose(mu, mu_ref, atol=2e-2, rtol=2e-2)
    assert jnp.allclose(log_var, lv_ref, atol=2e-2, rtol=2e-2)

    print("KERNEL_OK")
</pallas_src>

<mosaic_0001>
module attributes {stable_mosaic.version = 11 : i64} {
  func.func @_enc_mnist_kernel(%arg0: i32, %arg1: memref<2x784xf32, #tpu.memory_space<vmem>>, %arg2: memref<784x512xbf16, #tpu.memory_space<vmem>>, %arg3: memref<1x512xf32, #tpu.memory_space<vmem>>, %arg4: memref<512x128xbf16, #tpu.memory_space<vmem>>, %arg5: memref<1x128xf32, #tpu.memory_space<vmem>>, %arg6: memref<128x128xbf16, #tpu.memory_space<vmem>>, %arg7: memref<1x128xf32, #tpu.memory_space<vmem>>, %arg8: memref<2x128xf32, #tpu.memory_space<vmem>>) attributes {dimension_semantics = [#tpu.dimension_semantics<parallel>], iteration_bounds = array<i64: 1>, scalar_prefetch = 0 : i64, scratch_operands = 0 : i64, tpu.core_type = #tpu.core_type<tc>, window_params = [{transform_indices = @transform_0, window_bounds = array<i64: 2, 784>}, {pipeline_mode = #tpu.pipeline_mode<synchronous>, transform_indices = @transform_1, window_bounds = array<i64: 784, 512>}, {pipeline_mode = #tpu.pipeline_mode<synchronous>, transform_indices = @transform_2, window_bounds = array<i64: 1, 512>}, {pipeline_mode = #tpu.pipeline_mode<synchronous>, transform_indices = @transform_3, window_bounds = array<i64: 512, 128>}, {pipeline_mode = #tpu.pipeline_mode<synchronous>, transform_indices = @transform_4, window_bounds = array<i64: 1, 128>}, {pipeline_mode = #tpu.pipeline_mode<synchronous>, transform_indices = @transform_5, window_bounds = array<i64: 128, 128>}, {pipeline_mode = #tpu.pipeline_mode<synchronous>, transform_indices = @transform_6, window_bounds = array<i64: 1, 128>}, {transform_indices = @transform_7, window_bounds = array<i64: 2, 128>}]} {
    %c0 = arith.constant 0 : index
    %c0_0 = arith.constant 0 : index
    %0 = vector.load %arg1[%c0, %c0_0] : memref<2x784xf32, #tpu.memory_space<vmem>>, vector<2x784xf32>
    %1 = arith.truncf %0 : vector<2x784xf32> to vector<2x784xbf16>
    %c0_1 = arith.constant 0 : index
    %c0_2 = arith.constant 0 : index
    %2 = vector.load %arg2[%c0_1, %c0_2] : memref<784x512xbf16, #tpu.memory_space<vmem>>, vector<784x512xbf16>
    %cst = arith.constant dense<0.000000e+00> : vector<2x512xf32>
    %3 = tpu.matmul %1, %2, %cst {dimension_numbers = #tpu.dot_dimension_numbers<[1], [0], [0], [1], [0, 0, 1, 1], [], []>} : vector<2x784xbf16>, vector<784x512xbf16>, vector<2x512xf32> -> vector<2x512xf32>
    %c0_3 = arith.constant 0 : index
    %c0_4 = arith.constant 0 : index
    %4 = vector.load %arg3[%c0_3, %c0_4] : memref<1x512xf32, #tpu.memory_space<vmem>>, vector<1x512xf32>
    %5 = vector.broadcast %4 : vector<1x512xf32> to vector<2x512xf32>
    %6 = arith.addf %3, %5 : vector<2x512xf32>
    %cst_5 = arith.constant 0.000000e+00 : f32
    %7 = vector.broadcast %cst_5 : f32 to vector<2x512xf32>
    %8 = arith.maximumf %6, %7 : vector<2x512xf32>
    %9 = arith.truncf %8 : vector<2x512xf32> to vector<2x512xbf16>
    %c0_6 = arith.constant 0 : index
    %c0_7 = arith.constant 0 : index
    %10 = vector.load %arg4[%c0_6, %c0_7] : memref<512x128xbf16, #tpu.memory_space<vmem>>, vector<512x128xbf16>
    %cst_8 = arith.constant dense<0.000000e+00> : vector<2x128xf32>
    %11 = tpu.matmul %9, %10, %cst_8 {dimension_numbers = #tpu.dot_dimension_numbers<[1], [0], [0], [1], [0, 0, 1, 1], [], []>} : vector<2x512xbf16>, vector<512x128xbf16>, vector<2x128xf32> -> vector<2x128xf32>
    %c0_9 = arith.constant 0 : index
    %c0_10 = arith.constant 0 : index
    %12 = vector.load %arg5[%c0_9, %c0_10] : memref<1x128xf32, #tpu.memory_space<vmem>>, vector<1x128xf32>
    %13 = vector.broadcast %12 : vector<1x128xf32> to vector<2x128xf32>
    %14 = arith.addf %11, %13 : vector<2x128xf32>
    %cst_11 = arith.constant 0.000000e+00 : f32
    %15 = vector.broadcast %cst_11 : f32 to vector<2x128xf32>
    %16 = arith.maximumf %14, %15 : vector<2x128xf32>
    %17 = arith.truncf %16 : vector<2x128xf32> to vector<2x128xbf16>
    %c0_12 = arith.constant 0 : index
    %c0_13 = arith.constant 0 : index
    %18 = vector.load %arg6[%c0_12, %c0_13] : memref<128x128xbf16, #tpu.memory_space<vmem>>, vector<128x128xbf16>
    %cst_14 = arith.constant dense<0.000000e+00> : vector<2x128xf32>
    %19 = tpu.matmul %17, %18, %cst_14 {dimension_numbers = #tpu.dot_dimension_numbers<[1], [0], [0], [1], [0, 0, 1, 1], [], []>} : vector<2x128xbf16>, vector<128x128xbf16>, vector<2x128xf32> -> vector<2x128xf32>
    %c0_15 = arith.constant 0 : index
    %c0_16 = arith.constant 0 : index
    %20 = vector.load %arg7[%c0_15, %c0_16] : memref<1x128xf32, #tpu.memory_space<vmem>>, vector<1x128xf32>
    %21 = vector.broadcast %20 : vector<1x128xf32> to vector<2x128xf32>
    %22 = arith.addf %19, %21 : vector<2x128xf32>
    %c0_17 = arith.constant 0 : index
    %c0_18 = arith.constant 0 : index
    %23 = vector.load %arg8[%c0_17, %c0_18] : memref<2x128xf32, #tpu.memory_space<vmem>>, vector<2x128xf32>
    tpu.vector_store %arg8[%c0_17, %c0_18], %22 {strides = array<i32>} : memref<2x128xf32, #tpu.memory_space<vmem>>, vector<2x128xf32>,
    return
  }
  func.func @transform_0(%arg0: i32) -> (i32, i32) {
    %c0_i32 = arith.constant 0 : i32
    %c0_i32_0 = arith.constant 0 : i32
    return %arg0, %c0_i32 : i32, i32
  }
  func.func @transform_1(%arg0: i32) -> (i32, i32) {
    %c0_i32 = arith.constant 0 : i32
    %c0_i32_0 = arith.constant 0 : i32
    %c0_i32_1 = arith.constant 0 : i32
    return %c0_i32, %c0_i32_0 : i32, i32
  }
  func.func @transform_2(%arg0: i32) -> (i32, i32) {
    %c0_i32 = arith.constant 0 : i32
    %c0_i32_0 = arith.constant 0 : i32
    %c0_i32_1 = arith.constant 0 : i32
    return %c0_i32, %c0_i32_0 : i32, i32
  }
  func.func @transform_3(%arg0: i32) -> (i32, i32) {
    %c0_i32 = arith.constant 0 : i32
    %c0_i32_0 = arith.constant 0 : i32
    %c0_i32_1 = arith.constant 0 : i32
    return %c0_i32, %c0_i32_0 : i32, i32
  }
  func.func @transform_4(%arg0: i32) -> (i32, i32) {
    %c0_i32 = arith.constant 0 : i32
    %c0_i32_0 = arith.constant 0 : i32
    %c0_i32_1 = arith.constant 0 : i32
    return %c0_i32, %c0_i32_0 : i32, i32
  }
  func.func @transform_5(%arg0: i32) -> (i32, i32) {
    %c0_i32 = arith.constant 0 : i32
    %c0_i32_0 = arith.constant 0 : i32
    %c0_i32_1 = arith.constant 0 : i32
    return %c0_i32, %c0_i32_0 : i32, i32
  }
  func.func @transform_6(%arg0: i32) -> (i32, i32) {
    %c0_i32 = arith.constant 0 : i32
    %c0_i32_0 = arith.constant 0 : i32
    %c0_i32_1 = arith.constant 0 : i32
    return %c0_i32, %c0_i32_0 : i32, i32
  }
  func.func @transform_7(%arg0: i32) -> (i32, i32) {
    %c0_i32 = arith.constant 0 : i32
    %c0_i32_0 = arith.constant 0 : i32
    return %arg0, %c0_i32 : i32, i32
  }
}

</mosaic_0001>

<bundles_post_ra>
// kernel: _enc_mnist_call.1
= control target key start
LH: loop header
LB: loop body
LE: loop exit
PB: predicated region body
PF: predicated region fallthrough
CT: control target
= control target key end

     0   :  { %12 = vsyncpa [#allocation3], 0  ;;  %s3064_s0 = inlined_call_operand.hbm [shape: f32[2,784], index: 0, kind: input, shape index: {}]   ;;  %s3065_s1 = inlined_call_operand.hbm [shape: bf16[784,512], index: 1, kind: input, shape index: {}]   ;;  %s3066_s2 = inlined_call_operand.vmem [shape: f32[1,512], index: 2, kind: input, shape index: {}]   ;;  %s3067_s3 = inlined_call_operand.hbm [shape: bf16[512,128], index: 3, kind: input, shape index: {}]   ;;  %s3068_s4 = inlined_call_operand.vmem [shape: f32[1,128], index: 4, kind: input, shape index: {}]   ;;  %s3069_s5 = inlined_call_operand.hbm [shape: bf16[128,128], index: 5, kind: input, shape index: {}]   ;;  %s3070_s6 = inlined_call_operand.vmem [shape: f32[1,128], index: 6, kind: input, shape index: {}]   ;;  %s3071_s7 = inlined_call_operand.vmem [shape: f32[2,128], index: 7, kind: output, shape index: {}]  }
   0x1   :  { %13 = vsyncpa [#allocation5], 0 }
   0x2   :  { %14 = vsyncpa [#allocation8], 0  ;;  %s2914_s24 = smov [#allocation4]   ;;  %s2820_s28 = scalar_lea.hbm %s3065_s1, 25088 }
   0x3   :  { %s30_s25 = sshll.u32 %s2914_s24, 4  ;;  %p2821_p0 = scmp.ne.s32.totalorder %s3065_s1, %s2820_s28  ;;  %s31_s25 = int_to_ptr.vmem [resolvable:$true] %s30_s25 }
   0x4   :  { %p2824_p1 = scmp.lt.u32.totalorder %s2820_s28, %s3065_s1 }
   0x6   :  { %p2826_p2 = pnand %p2824_p1, %p2821_p0 }
   0x8   :  { %2829 = shalt.err (!%p2826_p2)
}
   0x9   :  { %s2830_s10 = scalar_lea.vmem %s31_s25, 25088  ;;  %p2835_p4 = scmp.lt.s32.totalorder %s31_s25, %s31_s25 }
   0xa   :  { %p2831_p3 = scmp.ne.s32.totalorder %s31_s25, %s2830_s10  ;;  %p2836_p5 = scmp.lt.s32.totalorder %s2830_s10, %s2830_s10 }
   0xc   :  { %p2837_p6 = por %p2836_p5, %p2835_p4 }
   0xe   :  { %p2838_p7 = pnand %p2837_p6, %p2831_p3 }
  0x10   :  { %2841 = shalt.err (!%p2838_p7)
}
  0x11   :  { %s2915_s11 = smov 256   ;;  %s2916_s12 = smov 16  }
  0x12   :  { %36 = dma.hbm_to_vmem [thread:$0]  %s3065_s1, 25088, %s31_s25, [#allocation5], %s2915_s11, %s2915_s11, %s2916_s12  }
  0x13   :  { %s2917_s15 = smov [#allocation2]   ;;  %s2918_s17 = smov [#allocation6]  }
  0x14   :  { %s21_s16 = sshll.u32 %s2917_s15, 4  ;;  %s44_s18 = sshll.u32 %s2918_s17, 4  ;;  %s22_s16 = int_to_ptr.vmem [resolvable:$true] %s21_s16  ;;  %s45_s18 = int_to_ptr.vmem [resolvable:$true] %s44_s18 }
  0x15   :  { %s2842_s21 = scalar_lea.hbm %s3064_s0, 224 }
  0x16   :  { %p2843_p8 = scmp.ne.s32.totalorder %s3064_s0, %s2842_s21  ;;  %p2846_p9 = scmp.lt.u32.totalorder %s2842_s21, %s3064_s0 }
  0x18   :  { %p2848_p10 = pnand %p2846_p9, %p2843_p8 }
  0x1a   :  { %2851 = shalt.err (!%p2848_p10)
}
  0x1b   :  { %s2852_s1 = scalar_lea.vmem %s22_s16, 224  ;;  %p2857_p12 = scmp.lt.s32.totalorder %s22_s16, %s22_s16 }
  0x1c   :  { %p2853_p11 = scmp.ne.s32.totalorder %s22_s16, %s2852_s1  ;;  %p2858_p13 = scmp.lt.s32.totalorder %s2852_s1, %s2852_s1 }
  0x1e   :  { %p2859_p0 = por %p2858_p13, %p2857_p12 }
  0x20   :  { %p2860_p1 = pnand %p2859_p0, %p2853_p11 }
  0x22   :  { %2863 = shalt.err (!%p2860_p1)
}
  0x23   :  { %24 = dma.hbm_to_vmem [thread:$0]  %s3064_s0, 224, %s22_s16, [#allocation3]  }
  0x24   :  { %s2864_s30 = scalar_lea.hbm %s3067_s3, 4096 }
  0x25   :  { %p2865_p2 = scmp.ne.s32.totalorder %s3067_s3, %s2864_s30  ;;  %p2868_p3 = scmp.lt.u32.totalorder %s2864_s30, %s3067_s3 }
  0x27   :  { %p2870_p4 = pnand %p2868_p3, %p2865_p2 }
  0x29   :  { %2873 = shalt.err (!%p2870_p4)
}
  0x2a   :  { %s2874_s12 = scalar_lea.vmem %s45_s18, 4096  ;;  %p2879_p6 = scmp.lt.s32.totalorder %s45_s18, %s45_s18 }
  0x2b   :  { %p2875_p5 = scmp.ne.s32.totalorder %s45_s18, %s2874_s12  ;;  %p2880_p7 = scmp.lt.s32.totalorder %s2874_s12, %s2874_s12 }
  0x2d   :  { %p2881_p8 = por %p2880_p7, %p2879_p6 }
  0x2f   :  { %p2882_p9 = pnand %p2881_p8, %p2875_p5 }
  0x31   :  { %2885 = shalt.err (!%p2882_p9)
}
  0x32   :  { %s2919_s0 = smov 64   ;;  %s2920_s13 = smov 4  }
  0x33   :  { %50 = dma.hbm_to_vmem [thread:$0]  %s3067_s3, 4096, %s45_s18, [#allocation5], %s2919_s0, %s2919_s0, %s2920_s13  }
  0x34   :  { %s2921_s16 = smov [#allocation7]   ;;  %s2886_s21 = scalar_lea.hbm %s3069_s5, 1024 }
  0x35   :  { %s58_s17 = sshll.u32 %s2921_s16, 4  ;;  %p2887_p10 = scmp.ne.s32.totalorder %s3069_s5, %s2886_s21  ;;  %s59_s17 = int_to_ptr.vmem [resolvable:$true] %s58_s17 }
  0x36   :  { %p2890_p11 = scmp.lt.u32.totalorder %s2886_s21, %s3069_s5 }
  0x38   :  { %p2892_p12 = pnand %p2890_p11, %p2887_p10 }
  0x3a   :  { %2895 = shalt.err (!%p2892_p12)
}
  0x3b   :  { %s2896_s1 = scalar_lea.vmem %s59_s17, 1024  ;;  %p2901_p0 = scmp.lt.s32.totalorder %s59_s17, %s59_s17 }
  0x3c   :  { %p2897_p13 = scmp.ne.s32.totalorder %s59_s17, %s2896_s1  ;;  %p2902_p1 = scmp.lt.s32.totalorder %s2896_s1, %s2896_s1 }
  0x3e   :  { %p2903_p2 = por %p2902_p1, %p2901_p0 }
  0x40   :  { %p2904_p3 = pnand %p2903_p2, %p2897_p13 }
  0x42   :  { %2907 = shalt.err (!%p2904_p3)
}
  0x43   :  { %64 = dma.hbm_to_vmem [thread:$0]  %s3069_s5, 1024, %s59_s17, [#allocation8], %s2919_s0, %s2919_s0, %s2920_s13  }
  0x44   :  { %2908 = dma.done.wait [#allocation3], 224  }
  0x45   :  { %2909 = vsyncadd [#allocation3], 4294967072 }
  0x46   :  { %2910 = dma.done.wait [#allocation5], 29184  }
  0x47   :  { %2911 = vsyncadd [#allocation5], 4294938112 }
  0x48   :  { %2912 = dma.done.wait [#allocation8], 1024  }
  0x49   :  { %2913 = vsyncadd [#allocation8], 4294966272  ;;  %v2922_v0 = vmov 0   ;;  %v2923_v1 = vmov 1983009808   ;;  %v88_v3 = vlaneseq  ;;  %vm1329_vm0 = vcmask 130048  }
  0x4a   :  { %1488 = vmatprep.mubr.bf16.mxu1 %v2922_v0  ;;  %v86_v2 = vunpack.c.l.s4 %v2923_v1  ;;  %v2484_v6 = vld [vmem:[#allocation4 + $0x4] ss:$16 sps:$4 sm:$0xff]   ;;  %v2488_v8 = vld [vmem:[#allocation4] ss:$16 sps:$4 sm:$0xff]   ;;  %v3020_v12 = vld [vmem:[#allocation2 + $0x8] sm:$0x3f] }
  0x4b   :  { %v3015_v5 = vshrl.u32 %v88_v3, 7  ;;  %v2486_v7 = vld [vmem:[#allocation4 + $0x604] ss:$16 sps:$4 sm:$0xff]   ;;  %1333 = vmatprep.subr.bf16.mxu0 %v2484_v6  ;;  %v2489_v9 = vld [vmem:[#allocation4 + $0x600] ss:$16 sps:$4 sm:$0xff]   ;;  %v101_v13 = vcombine.high %v3020_v12, %v3020_v12  ;;  %vm2925_vm1 = vmmov 0  }
  0x4c   :  { %v87_v4 = vunpack.c.0.s8 %v86_v2  ;;  %1456 = vmatprep.subr.bf16.mxu1 %v2486_v7  ;;  %v2490_v11 = vld [vmem:[#allocation4 + $0x24] ss:$16 sps:$4 sm:$0xff]   ;;  %1334 = vmatpush1.bf16.msra.mxu0 %v2488_v8  ;;  %v2495_v14 = vld [vmem:[#allocation4 + $0xc] ss:$16 sps:$4 sm:$0xff]   ;;  %v2496_v15 = vld [vmem:[#allocation4 + $0x20] ss:$16 sps:$4 sm:$0xff]  }
  0x4d   :  { %1457 = vmatpush1.bf16.msra.mxu1 %v2489_v9  ;;  %1335 = vmatprep.subr.bf16.mxu0 %v2490_v11  ;;  %v2497_v17 = vld [vmem:[#allocation4 + $0x44] ss:$16 sps:$4 sm:$0xff]   ;;  %v2493_v18 = vld [vmem:[#allocation4 + $0x8] ss:$16 sps:$4 sm:$0xff]   ;;  %v2501_v19 = vld [vmem:[#allocation4 + $0x2c] ss:$16 sps:$4 sm:$0xff]  }
  0x4e   :  { %v3018_v10 = vsub.s32 %v87_v4, %v3015_v5  ;;  %1497 = vmatprep.subr.bf16.mxu1 %v2495_v14  ;;  %v2502_v21 = vld [vmem:[#allocation4 + $0x40] ss:$16 sps:$4 sm:$0xff]   ;;  %v2503_v22 = vld [vmem:[#allocation4 + $0x64] ss:$16 sps:$4 sm:$0xff]   ;;  %v2499_v23 = vld [vmem:[#allocation4 + $0x28] ss:$16 sps:$4 sm:$0xff]  }
  0x4f   :  { %v2507_v24 = vld [vmem:[#allocation4 + $0x4c] ss:$16 sps:$4 sm:$0xff]   ;;  %v2508_v25 = vld [vmem:[#allocation4 + $0x60] ss:$16 sps:$4 sm:$0xff]   ;;  %v2509_v26 = vld [vmem:[#allocation4 + $0x84] ss:$16 sps:$4 sm:$0xff]  }
  0x50   :  { %v115_v16 = vrot.slane %v101_v13, %v3018_v10  ;;  %1336 = vmatpush1.bf16.msra.mxu0 %v2496_v15  ;;  %v2505_v27 = vld [vmem:[#allocation4 + $0x48] ss:$16 sps:$4 sm:$0xff]   ;;  %v2513_v28 = vld [vmem:[#allocation4 + $0x6c] ss:$16 sps:$4 sm:$0xff]   ;;  %v2514_v29 = vld [vmem:[#allocation4 + $0x80] ss:$16 sps:$4 sm:$0xff]  }
  0x51   :  { %1337 = vmatprep.subr.bf16.mxu0 %v2497_v17  ;;  %v2515_v30 = vld [vmem:[#allocation4 + $0xa4] ss:$16 sps:$4 sm:$0xff]   ;;  %v2511_v31 = vld [vmem:[#allocation4 + $0x68] ss:$16 sps:$4 sm:$0xff]   ;;  %v2519_v32 = vld [vmem:[#allocation4 + $0x8c] ss:$16 sps:$4 sm:$0xff]  }
  0x52   :  { %v3025_v20 = vpack.c.bf16 %v115_v16, %v115_v16  ;;  %v2520_v33 = vld [vmem:[#allocation4 + $0xa0] ss:$16 sps:$4 sm:$0xff]   ;;  %v2521_v34 = vld [vmem:[#allocation4 + $0xc4] ss:$16 sps:$4 sm:$0xff]   ;;  %v2517_v35 = vld [vmem:[#allocation4 + $0x88] ss:$16 sps:$4 sm:$0xff]  }
  0x53   :  { %v2525_v36 = vld [vmem:[#allocation4 + $0xac] ss:$16 sps:$4 sm:$0xff]   ;;  %v2526_v37 = vld [vmem:[#allocation4 + $0xc0] ss:$16 sps:$4 sm:$0xff]   ;;  %v2527_v38 = vld [vmem:[#allocation4 + $0xe4] ss:$16 sps:$4 sm:$0xff]  }
  0x54   :  { %2329 = vmatmul.mubr.msk.bf16.vlgmr.msra.gmra.mrb[0].mxu1 %vm1329_vm0, %v3025_v20  ;;  %1338 = vmatpush1.bf16.msra.mxu0 %v2502_v21  ;;  %v2523_v39 = vld [vmem:[#allocation4 + $0xa8] ss:$16 sps:$4 sm:$0xff]   ;;  %v2531_v40 = vld [vmem:[#allocation4 + $0xcc] ss:$16 sps:$4 sm:$0xff]   ;;  %v2532_v41 = vld [vmem:[#allocation4 + $0xe0] ss:$16 sps:$4 sm:$0xff]  }
  0x55   :  { %1498 = vmatpush1.bf16.msra.mxu1 %v2493_v18  ;;  %1339 = vmatprep.subr.bf16.mxu0 %v2503_v22  ;;  %v2533_v42 = vld [vmem:[#allocation4 + $0x104] ss:$16 sps:$4 sm:$0xff]   ;;  %v2529_v43 = vld [vmem:[#allocation4 + $0xc8] ss:$16 sps:$4 sm:$0xff]   ;;  %v2537_v44 = vld [vmem:[#allocation4 + $0xec] ss:$16 sps:$4 sm:$0xff]  }
  0x56   :  { %1499 = vmatprep.subr.bf16.mxu1 %v2501_v19  ;;  %v2538_v45 = vld [vmem:[#allocation4 + $0x100] ss:$16 sps:$4 sm:$0xff]   ;;  %v2539_v46 = vld [vmem:[#allocation4 + $0x124] ss:$16 sps:$4 sm:$0xff]   ;;  %v2535_v47 = vld [vmem:[#allocation4 + $0xe8] ss:$16 sps:$4 sm:$0xff]  }
  0x57   :  { %v2543_v48 = vld [vmem:[#allocation4 + $0x10c] ss:$16 sps:$4 sm:$0xff]   ;;  %v2544_v49 = vld [vmem:[#allocation4 + $0x120] ss:$16 sps:$4 sm:$0xff]   ;;  %v2545_v50 = vld [vmem:[#allocation4 + $0x144] ss:$16 sps:$4 sm:$0xff]  }
  0x58   :  { %1340 = vmatpush1.bf16.msra.mxu0 %v2508_v25  ;;  %v2541_v51 = vld [vmem:[#allocation4 + $0x108] ss:$16 sps:$4 sm:$0xff]   ;;  %v2549_v52 = vld [vmem:[#allocation4 + $0x12c] ss:$16 sps:$4 sm:$0xff]   ;;  %v2550_v53 = vld [vmem:[#allocation4 + $0x140] ss:$16 sps:$4 sm:$0xff]   ;;  %v3037_v25 = vrot.slane %v3020_v12, %v3018_v10 }
  0x59   :  { %1500 = vmatpush1.bf16.msra.mxu1 %v2499_v23  ;;  %1341 = vmatprep.subr.bf16.mxu0 %v2509_v26  ;;  %v2551_v54 = vld [vmem:[#allocation4 + $0x164] ss:$16 sps:$4 sm:$0xff]   ;;  %v2547_v55 = vld [vmem:[#allocation4 + $0x128] ss:$16 sps:$4 sm:$0xff]   ;;  %v2555_v57 = vld [vmem:[#allocation4 + $0x14c] ss:$16 sps:$4 sm:$0xff]  }
  0x5a   :  { %1501 = vmatprep.subr.bf16.mxu1 %v2507_v24  ;;  %v80_v56 = vld [vmem:[#allocation2] sm:$0xff]  ;;  %v2561_v63 = vld [vmem:[#allocation4 + $0x16c] ss:$16 sps:$4 sm:$0xff]  }
  0x5b   :  { %v2556_v58 = vld [vmem:[#allocation4 + $0x160] ss:$16 sps:$4 sm:$0xff]   ;;  %v91_v59 = vrot.slane %v80_v56, %v3018_v10  ;;  %v2557_v60 = vld [vmem:[#allocation4 + $0x184] ss:$16 sps:$4 sm:$0xff]   ;;  %v2553_v62 = vld [vmem:[#allocation4 + $0x148] ss:$16 sps:$4 sm:$0xff]   ;;  %v84_v9 = vcombine.high %v80_v56, %v80_v56 }
  0x5c   :  { %1342 = vmatpush1.bf16.msra.mxu0 %v2514_v29  ;;  %v2562_v1 = vld [vmem:[#allocation4 + $0x180] ss:$16 sps:$4 sm:$0xff]   ;;  %v2563_v3 = vld [vmem:[#allocation4 + $0x1a4] ss:$16 sps:$4 sm:$0xff]   ;;  %v2559_v4 = vld [vmem:[#allocation4 + $0x168] ss:$16 sps:$4 sm:$0xff]  }
  0x5d   :  { %1502 = vmatpush1.bf16.msra.mxu1 %v2505_v27  ;;  %1343 = vmatprep.subr.bf16.mxu0 %v2515_v30  ;;  %v99_v61 = vcombine.high %v91_v59, %v91_v59  ;;  %v2567_v6 = vld [vmem:[#allocation4 + $0x18c] ss:$16 sps:$4 sm:$0xff]   ;;  %v2568_v7 = vld [vmem:[#allocation4 + $0x1a0] ss:$16 sps:$4 sm:$0xff]   ;;  %v2569_v8 = vld [vmem:[#allocation4 + $0x1c4] ss:$16 sps:$4 sm:$0xff]   ;;  %v3031_v16 = vrot.slane %v84_v9, %v3018_v10  ;;  %v124_v24 = vpack.c.bf16 %v91_v59, %v91_v59 }
  0x5e   :  { %1503 = vmatprep.subr.bf16.mxu1 %v2513_v28  ;;  %v2565_v11 = vld [vmem:[#allocation4 + $0x188] ss:$16 sps:$4 sm:$0xff]   ;;  %v2573_v13 = vld [vmem:[#allocation4 + $0x1ac] ss:$16 sps:$4 sm:$0xff]   ;;  %v2574_v14 = vld [vmem:[#allocation4 + $0x1c0] ss:$16 sps:$4 sm:$0xff]  }
  0x5f   :  { %v125_v2 = vpack.c.bf16 %v99_v61, %v99_v61  ;;  %v2575_v15 = vld [vmem:[#allocation4 + $0x1e4] ss:$16 sps:$4 sm:$0xff]   ;;  %v2571_v17 = vld [vmem:[#allocation4 + $0x1a8] ss:$16 sps:$4 sm:$0xff]   ;;  %v2579_v18 = vld [vmem:[#allocation4 + $0x1cc] ss:$16 sps:$4 sm:$0xff]   ;;  %v100_v22 = vcombine.high %v3031_v16, %v3031_v16 }
  0x60   :  { %1344 = vmatpush1.bf16.msra.mxu0 %v2520_v33  ;;  %v2580_v19 = vld [vmem:[#allocation4 + $0x1e0] ss:$16 sps:$4 sm:$0xff]   ;;  %v2584_v21 = vld [vmem:[#allocation4 + $0x204] ss:$16 sps:$4 sm:$0xff]   ;;  %v2577_v23 = vld [vmem:[#allocation4 + $0x1c8] ss:$16 sps:$4 sm:$0xff]  }
  0x61   :  { %1504 = vmatpush1.bf16.msra.mxu1 %v2511_v31  ;;  %1345 = vmatprep.subr.bf16.mxu0 %v2521_v34  ;;  %v2582_v26 = vld [vmem:[#allocation4 + $0x200] ss:$16 sps:$4 sm:$0xff]   ;;  %v2587_v27 = vld [vmem:[#allocation4 + $0x1ec] ss:$16 sps:$4 sm:$0xff]   ;;  %v2590_v28 = vld [vmem:[#allocation4 + $0x224] ss:$16 sps:$4 sm:$0xff]   ;;  %v127_v29 = vpack.c.bf16 %v100_v22, %v100_v22 }
  0x62   :  { %1505 = vmatprep.subr.bf16.mxu1 %v2519_v32  ;;  %1365 = vmatprep.mubr.bf16.mxu0 %v125_v2  ;;  %v2585_v30 = vld [vmem:[#allocation4 + $0x1e8] ss:$16 sps:$4 sm:$0xff]   ;;  %v2588_v31 = vld [vmem:[#allocation4 + $0x220] ss:$16 sps:$4 sm:$0xff]   ;;  %v2593_v32 = vld [vmem:[#allocation4 + $0x20c] ss:$16 sps:$4 sm:$0xff]  }
  0x63   :  { %1529 = vmatprep.mubr.bf16.mxu1 %v125_v2  ;;  %v2596_v33 = vld [vmem:[#allocation4 + $0x244] ss:$16 sps:$4 sm:$0xff]   ;;  %v2591_v10 = vld [vmem:[#allocation4 + $0x208] ss:$16 sps:$4 sm:$0xff]   ;;  %v2594_v12 = vld [vmem:[#allocation4 + $0x240] ss:$16 sps:$4 sm:$0xff]  }
  0x64   :  { %1346 = vmatpush1.bf16.msra.mxu0 %v2526_v37  ;;  %v2599_v34 = vld [vmem:[#allocation4 + $0x22c] ss:$16 sps:$4 sm:$0xff]   ;;  %v2600_v37 = vld [vmem:[#allocation4 + $0x260] ss:$16 sps:$4 sm:$0xff]   ;;  %v2627_v56 = vld [vmem:[#allocation4 + $0x2c8] ss:$16 sps:$4 sm:$0xff]  }
  0x65   :  { %1506 = vmatpush1.bf16.msra.mxu1 %v2517_v35  ;;  %1347 = vmatprep.subr.bf16.mxu0 %v2527_v38  ;;  %v2602_v35 = vld [vmem:[#allocation4 + $0x264] ss:$16 sps:$4 sm:$0xff]   ;;  %v2605_v38 = vld [vmem:[#allocation4 + $0x24c] ss:$16 sps:$4 sm:$0xff]   ;;  %v2636_v61 = vld [vmem:[#allocation4 + $0x320] ss:$16 sps:$4 sm:$0xff]  }
  0x66   :  { %1507 = vmatprep.subr.bf16.mxu1 %v2525_v36  ;;  %v2597_v36 = vld [vmem:[#allocation4 + $0x228] ss:$16 sps:$4 sm:$0xff]   ;;  %v2638_v59 = vld [vmem:[#allocation4 + $0x324] ss:$16 sps:$4 sm:$0xff]   ;;  %v2642_v2 = vld [vmem:[#allocation4 + $0x340] ss:$16 sps:$4 sm:$0xff]  }
  0x67   :  { %v2656_v9 = vld [vmem:[#allocation4 + $0x384] ss:$16 sps:$4 sm:$0xff]   ;;  %v2663_v22 = vld [vmem:[#allocation4 + $0x388] ss:$16 sps:$4 sm:$0xff]  }
  0x68   :  { %1348 = vmatpush1.bf16.msra.mxu0 %v2532_v41  ;;  %v2606_v41 = vld [vmem:[#allocation4 + $0x280] ss:$16 sps:$4 sm:$0xff]  }
  0x69   :  { %1508 = vmatpush1.bf16.msra.mxu1 %v2523_v39  ;;  %1349 = vmatprep.subr.bf16.mxu0 %v2533_v42  ;;  %v2608_v39 = vld [vmem:[#allocation4 + $0x284] ss:$16 sps:$4 sm:$0xff]   ;;  %v2611_v42 = vld [vmem:[#allocation4 + $0x26c] ss:$16 sps:$4 sm:$0xff]  }
  0x6a   :  { %1509 = vmatprep.subr.bf16.mxu1 %v2531_v40  ;;  %v2603_v40 = vld [vmem:[#allocation4 + $0x248] ss:$16 sps:$4 sm:$0xff]  }
  0x6c   :  { %1350 = vmatpush1.bf16.msra.mxu0 %v2538_v45  ;;  %v2612_v45 = vld [vmem:[#allocation4 + $0x2a0] ss:$16 sps:$4 sm:$0xff]  }
  0x6d   :  { %1510 = vmatpush1.bf16.msra.mxu1 %v2529_v43  ;;  %1351 = vmatprep.subr.bf16.mxu0 %v2539_v46  ;;  %v2614_v43 = vld [vmem:[#allocation4 + $0x2a4] ss:$16 sps:$4 sm:$0xff]   ;;  %v2617_v46 = vld [vmem:[#allocation4 + $0x28c] ss:$16 sps:$4 sm:$0xff]  }
  0x6e   :  { %1511 = vmatprep.subr.bf16.mxu1 %v2537_v44  ;;  %v2609_v44 = vld [vmem:[#allocation4 + $0x268] ss:$16 sps:$4 sm:$0xff]  }
  0x70   :  { %1352 = vmatpush1.bf16.msra.mxu0 %v2544_v49  ;;  %v2618_v49 = vld [vmem:[#allocation4 + $0x2c0] ss:$16 sps:$4 sm:$0xff]  }
  0x71   :  { %1512 = vmatpush1.bf16.msra.mxu1 %v2535_v47  ;;  %1353 = vmatprep.subr.bf16.mxu0 %v2545_v50  ;;  %v2620_v47 = vld [vmem:[#allocation4 + $0x2c4] ss:$16 sps:$4 sm:$0xff]   ;;  %v2623_v50 = vld [vmem:[#allocation4 + $0x2ac] ss:$16 sps:$4 sm:$0xff]  }
  0x72   :  { %1513 = vmatprep.subr.bf16.mxu1 %v2543_v48  ;;  %v2615_v48 = vld [vmem:[#allocation4 + $0x288] ss:$16 sps:$4 sm:$0xff]  }
  0x74   :  { %1354 = vmatpush1.bf16.msra.mxu0 %v2550_v53  ;;  %v2624_v53 = vld [vmem:[#allocation4 + $0x2e0] ss:$16 sps:$4 sm:$0xff]  }
  0x75   :  { %1514 = vmatpush1.bf16.msra.mxu1 %v2541_v51  ;;  %1355 = vmatprep.subr.bf16.mxu0 %v2551_v54  ;;  %v2626_v51 = vld [vmem:[#allocation4 + $0x2e4] ss:$16 sps:$4 sm:$0xff]   ;;  %v2629_v54 = vld [vmem:[#allocation4 + $0x2cc] ss:$16 sps:$4 sm:$0xff]  }
  0x76   :  { %1515 = vmatprep.subr.bf16.mxu1 %v2549_v52  ;;  %v2621_v52 = vld [vmem:[#allocation4 + $0x2a8] ss:$16 sps:$4 sm:$0xff]  }
  0x78   :  { %1356 = vmatpush1.bf16.msra.mxu0 %v2556_v58  ;;  %v2635_v58 = vld [vmem:[#allocation4 + $0x2ec] ss:$16 sps:$4 sm:$0xff]  }
  0x79   :  { %1516 = vmatpush1.bf16.msra.mxu1 %v2547_v55  ;;  %1357 = vmatprep.subr.bf16.mxu0 %v2557_v60  ;;  %v2632_v55 = vld [vmem:[#allocation4 + $0x304] ss:$16 sps:$4 sm:$0xff]   ;;  %v2633_v60 = vld [vmem:[#allocation4 + $0x2e8] ss:$16 sps:$4 sm:$0xff]  }
  0x7a   :  { %1517 = vmatprep.subr.bf16.mxu1 %v2555_v57  ;;  %v2630_v57 = vld [vmem:[#allocation4 + $0x300] ss:$16 sps:$4 sm:$0xff]  }
  0x7c   :  { %1358 = vmatpush1.bf16.msra.mxu0 %v2562_v1  ;;  %v2639_v1 = vld [vmem:[#allocation4 + $0x308] ss:$16 sps:$4 sm:$0xff]  }
  0x7d   :  { %1518 = vmatpush1.bf16.msra.mxu1 %v2553_v62  ;;  %1359 = vmatprep.subr.bf16.mxu0 %v2563_v3  ;;  %v2641_v62 = vld [vmem:[#allocation4 + $0x30c] ss:$16 sps:$4 sm:$0xff]  }
  0x7e   :  { %1519 = vmatprep.subr.bf16.mxu1 %v2561_v63  ;;  %v2644_v63 = vld [vmem:[#allocation4 + $0x344] ss:$16 sps:$4 sm:$0xff]   ;;  %v2647_v3 = vld [vmem:[#allocation4 + $0x32c] ss:$16 sps:$4 sm:$0xff]  }
  0x80   :  { %1360 = vmatpush1.bf16.msra.mxu0 %v2568_v7  ;;  %v2648_v7 = vld [vmem:[#allocation4 + $0x360] ss:$16 sps:$4 sm:$0xff]  }
  0x81   :  { %1520 = vmatpush1.bf16.msra.mxu1 %v2559_v4  ;;  %1361 = vmatprep.subr.bf16.mxu0 %v2569_v8  ;;  %v2650_v4 = vld [vmem:[#allocation4 + $0x364] ss:$16 sps:$4 sm:$0xff]   ;;  %v2653_v8 = vld [vmem:[#allocation4 + $0x34c] ss:$16 sps:$4 sm:$0xff]  }
  0x82   :  { %1521 = vmatprep.subr.bf16.mxu1 %v2567_v6  ;;  %v2645_v6 = vld [vmem:[#allocation4 + $0x328] ss:$16 sps:$4 sm:$0xff]  }
  0x84   :  { %1362 = vmatpush1.bf16.msra.mxu0 %v2574_v14  ;;  %v2659_v14 = vld [vmem:[#allocation4 + $0x36c] ss:$16 sps:$4 sm:$0xff]  }
  0x85   :  { %1522 = vmatpush1.bf16.msra.mxu1 %v2565_v11  ;;  %1363 = vmatprep.subr.bf16.mxu0 %v2575_v15  ;;  %v2651_v11 = vld [vmem:[#allocation4 + $0x348] ss:$16 sps:$4 sm:$0xff]   ;;  %v2662_v15 = vld [vmem:[#allocation4 + $0x3a4] ss:$16 sps:$4 sm:$0xff]  }
  0x86   :  { %1523 = vmatprep.subr.bf16.mxu1 %v2573_v13  ;;  %v2654_v13 = vld [vmem:[#allocation4 + $0x380] ss:$16 sps:$4 sm:$0xff]  }
  0x88   :  { %1364 = vmatpush1.bf16.msra.mxu0 %v2580_v19  ;;  %v2665_v19 = vld [vmem:[#allocation4 + $0x38c] ss:$16 sps:$4 sm:$0xff]  }
  0x89   :  { %1524 = vmatpush1.bf16.msra.mxu1 %v2571_v17  ;;  %1374 = vmatprep.subr.bf16.mxu0 %v2584_v21  ;;  %v2657_v17 = vld [vmem:[#allocation4 + $0x368] ss:$16 sps:$4 sm:$0xff]   ;;  %v2668_v21 = vld [vmem:[#allocation4 + $0x3c4] ss:$16 sps:$4 sm:$0xff]  }
  0x8a   :  { %1525 = vmatprep.subr.bf16.mxu1 %v2579_v18  ;;  %v2660_v18 = vld [vmem:[#allocation4 + $0x3a0] ss:$16 sps:$4 sm:$0xff]  }
  0x8b   :  { %1366 = vmatmul.mubr.bf16.vlgmr.msra.gmra.mrb[0].mxu0 %v124_v24 }
  0x8c   :  { %1375 = vmatpush1.bf16.msra.mxu0 %v2582_v26  ;;  %1406 = vmatprep.mubr.bf16.mxu0 %v127_v29  ;;  %v2674_v26 = vld [vmem:[#allocation4 + $0x3e4] ss:$16 sps:$4 sm:$0xff]  }
  0x8d   :  { %1526 = vmatpush1.bf16.msra.mxu1 %v2577_v23  ;;  %1376 = vmatprep.subr.bf16.mxu0 %v2590_v28  ;;  %v2666_v23 = vld [vmem:[#allocation4 + $0x3c0] ss:$16 sps:$4 sm:$0xff]  }
  0x8e   :  { %1527 = vmatprep.subr.bf16.mxu1 %v2587_v27  ;;  %v2669_v27 = vld [vmem:[#allocation4 + $0x3a8] ss:$16 sps:$4 sm:$0xff]   ;;  %v2672_v28 = vld [vmem:[#allocation4 + $0x3e0] ss:$16 sps:$4 sm:$0xff]  }
  0x90   :  { %1377 = vmatpush1.bf16.msra.mxu0 %v2588_v31  ;;  %v116_v31 = vcombine.high %v3037_v25, %v3037_v25 }
  0x91   :  { %1528 = vmatpush1.bf16.msra.mxu1 %v2585_v30  ;;  %1378 = vmatprep.subr.bf16.mxu0 %v2596_v33  ;;  %v2680_v30 = vld [vmem:[#allocation4 + $0x404] ss:$16 sps:$4 sm:$0xff]   ;;  %v126_v33 = vpack.c.bf16 %v3031_v16, %v3031_v16  ;;  %v2690_v16 = vld [vmem:[#allocation4 + $0x440] ss:$16 sps:$4 sm:$0xff]  }
  0x92   :  { %1538 = vmatprep.subr.bf16.mxu1 %v2593_v32  ;;  %v2675_v32 = vld [vmem:[#allocation4 + $0x3c8] ss:$16 sps:$4 sm:$0xff]  }
  0x94   :  { %1530 = vmatmul.mubr.bf16.vlgmr.msra.gmra.mrb[4].mxu1 %v124_v24  ;;  %1379 = vmatpush1.bf16.msra.mxu0 %v2594_v12  ;;  %v2671_v24 = vld [vmem:[#allocation4 + $0x3ac] ss:$16 sps:$4 sm:$0xff]  }
  0x95   :  { %1539 = vmatpush1.bf16.msra.mxu1 %v2591_v10  ;;  %1570 = vmatprep.mubr.bf16.mxu1 %v127_v29  ;;  %v2677_v29 = vld [vmem:[#allocation4 + $0x3cc] ss:$16 sps:$4 sm:$0xff]   ;;  %v2678_v10 = vld [vmem:[#allocation4 + $0x400] ss:$16 sps:$4 sm:$0xff]  }
  0x96   :  { %1540 = vmatprep.subr.bf16.mxu1 %v2599_v34  ;;  %1380 = vmatprep.subr.bf16.mxu0 %v2602_v35  ;;  %v2683_v12 = vld [vmem:[#allocation4 + $0x3ec] ss:$16 sps:$4 sm:$0xff]   ;;  %v2686_v34 = vld [vmem:[#allocation4 + $0x424] ss:$16 sps:$4 sm:$0xff]   ;;  %v129_v35 = vpack.c.bf16 %v116_v31, %v116_v31  ;;  %v2762_v31 = vld [vmem:[#allocation4 + $0x5c0] ss:$16 sps:$4 sm:$0xff]  }
  0x98   :  { %1381 = vmatpush1.bf16.msra.mxu0 %v2600_v37  ;;  %v2684_v37 = vld [vmem:[#allocation4 + $0x420] ss:$16 sps:$4 sm:$0xff]  }
  0x99   :  { %1541 = vmatpush1.bf16.msra.mxu1 %v2597_v36  ;;  %1382 = vmatprep.subr.bf16.mxu0 %v2608_v39  ;;  %v2681_v36 = vld [vmem:[#allocation4 + $0x3e8] ss:$16 sps:$4 sm:$0xff]   ;;  %v2692_v39 = vld [vmem:[#allocation4 + $0x444] ss:$16 sps:$4 sm:$0xff]  }
  0x9a   :  { %1542 = vmatprep.subr.bf16.mxu1 %v2605_v38  ;;  %v2689_v38 = vld [vmem:[#allocation4 + $0x40c] ss:$16 sps:$4 sm:$0xff]  }
  0x9c   :  { %1383 = vmatpush1.bf16.msra.mxu0 %v2606_v41  ;;  %v2695_v41 = vld [vmem:[#allocation4 + $0x42c] ss:$16 sps:$4 sm:$0xff]  }
  0x9d   :  { %1543 = vmatpush1.bf16.msra.mxu1 %v2603_v40  ;;  %1384 = vmatprep.subr.bf16.mxu0 %v2614_v43  ;;  %v2687_v40 = vld [vmem:[#allocation4 + $0x408] ss:$16 sps:$4 sm:$0xff]  }
  0x9e   :  { %1544 = vmatprep.subr.bf16.mxu1 %v2611_v42  ;;  %v2698_v42 = vld [vmem:[#allocation4 + $0x464] ss:$16 sps:$4 sm:$0xff]   ;;  %v2693_v43 = vld [vmem:[#allocation4 + $0x428] ss:$16 sps:$4 sm:$0xff]  }
  0xa0   :  { %1385 = vmatpush1.bf16.msra.mxu0 %v2612_v45  ;;  %v2701_v45 = vld [vmem:[#allocation4 + $0x44c] ss:$16 sps:$4 sm:$0xff]  }
  0xa1   :  { %1545 = vmatpush1.bf16.msra.mxu1 %v2609_v44  ;;  %1386 = vmatprep.subr.bf16.mxu0 %v2620_v47  ;;  %v2696_v44 = vld [vmem:[#allocation4 + $0x460] ss:$16 sps:$4 sm:$0xff]   ;;  %v2699_v47 = vld [vmem:[#allocation4 + $0x448] ss:$16 sps:$4 sm:$0xff]  }
  0xa2   :  { %1546 = vmatprep.subr.bf16.mxu1 %v2617_v46  ;;  %v2704_v46 = vld [vmem:[#allocation4 + $0x484] ss:$16 sps:$4 sm:$0xff]  }
  0xa4   :  { %1387 = vmatpush1.bf16.msra.mxu0 %v2618_v49  ;;  %v2707_v49 = vld [vmem:[#allocation4 + $0x46c] ss:$16 sps:$4 sm:$0xff]  }
  0xa5   :  { %1547 = vmatpush1.bf16.msra.mxu1 %v2615_v48  ;;  %1388 = vmatprep.subr.bf16.mxu0 %v2626_v51  ;;  %v2702_v48 = vld [vmem:[#allocation4 + $0x480] ss:$16 sps:$4 sm:$0xff]   ;;  %v2710_v51 = vld [vmem:[#allocation4 + $0x4a4] ss:$16 sps:$4 sm:$0xff]  }
  0xa6   :  { %1548 = vmatprep.subr.bf16.mxu1 %v2623_v50  ;;  %v2705_v50 = vld [vmem:[#allocation4 + $0x468] ss:$16 sps:$4 sm:$0xff]  }
  0xa8   :  { %1389 = vmatpush1.bf16.msra.mxu0 %v2624_v53  ;;  %v2713_v53 = vld [vmem:[#allocation4 + $0x48c] ss:$16 sps:$4 sm:$0xff]  }
  0xa9   :  { %1549 = vmatpush1.bf16.msra.mxu1 %v2621_v52  ;;  %1390 = vmatprep.subr.bf16.mxu0 %v2632_v55  ;;  %v2708_v52 = vld [vmem:[#allocation4 + $0x4a0] ss:$16 sps:$4 sm:$0xff]   ;;  %v2711_v55 = vld [vmem:[#allocation4 + $0x488] ss:$16 sps:$4 sm:$0xff]  }
  0xaa   :  { %1550 = vmatprep.subr.bf16.mxu1 %v2629_v54  ;;  %v2716_v54 = vld [vmem:[#allocation4 + $0x4c4] ss:$16 sps:$4 sm:$0xff]  }
  0xac   :  { %1391 = vmatpush1.bf16.msra.mxu0 %v2630_v57  ;;  %v2719_v57 = vld [vmem:[#allocation4 + $0x4ac] ss:$16 sps:$4 sm:$0xff]  }
  0xad   :  { %1551 = vmatpush1.bf16.msra.mxu1 %v2627_v56  ;;  %1392 = vmatprep.subr.bf16.mxu0 %v2638_v59  ;;  %v2714_v56 = vld [vmem:[#allocation4 + $0x4c0] ss:$16 sps:$4 sm:$0xff]   ;;  %v2717_v59 = vld [vmem:[#allocation4 + $0x4a8] ss:$16 sps:$4 sm:$0xff]  }
  0xae   :  { %1552 = vmatprep.subr.bf16.mxu1 %v2635_v58  ;;  %v2722_v58 = vld [vmem:[#allocation4 + $0x4e4] ss:$16 sps:$4 sm:$0xff]  }
  0xb0   :  { %1393 = vmatpush1.bf16.msra.mxu0 %v2636_v61  ;;  %v2725_v61 = vld [vmem:[#allocation4 + $0x4cc] ss:$16 sps:$4 sm:$0xff]  }
  0xb1   :  { %1553 = vmatpush1.bf16.msra.mxu1 %v2633_v60  ;;  %1394 = vmatprep.subr.bf16.mxu0 %v2644_v63  ;;  %v2720_v60 = vld [vmem:[#allocation4 + $0x4e0] ss:$16 sps:$4 sm:$0xff]   ;;  %v2723_v63 = vld [vmem:[#allocation4 + $0x4c8] ss:$16 sps:$4 sm:$0xff]  }
  0xb2   :  { %1554 = vmatprep.subr.bf16.mxu1 %v2641_v62  ;;  %v2728_v62 = vld [vmem:[#allocation4 + $0x504] ss:$16 sps:$4 sm:$0xff]  }
  0xb4   :  { %1395 = vmatpush1.bf16.msra.mxu0 %v2642_v2  ;;  %v2731_v2 = vld [vmem:[#allocation4 + $0x4ec] ss:$16 sps:$4 sm:$0xff]  }
  0xb5   :  { %1555 = vmatpush1.bf16.msra.mxu1 %v2639_v1  ;;  %1396 = vmatprep.subr.bf16.mxu0 %v2650_v4  ;;  %v2726_v1 = vld [vmem:[#allocation4 + $0x500] ss:$16 sps:$4 sm:$0xff]   ;;  %v2729_v4 = vld [vmem:[#allocation4 + $0x4e8] ss:$16 sps:$4 sm:$0xff]  }
  0xb6   :  { %1556 = vmatprep.subr.bf16.mxu1 %v2647_v3  ;;  %v2734_v3 = vld [vmem:[#allocation4 + $0x524] ss:$16 sps:$4 sm:$0xff]  }
  0xb8   :  { %1397 = vmatpush1.bf16.msra.mxu0 %v2648_v7  ;;  %v2737_v7 = vld [vmem:[#allocation4 + $0x50c] ss:$16 sps:$4 sm:$0xff]  }
  0xb9   :  { %1557 = vmatpush1.bf16.msra.mxu1 %v2645_v6  ;;  %1398 = vmatprep.subr.bf16.mxu0 %v2656_v9  ;;  %v2732_v6 = vld [vmem:[#allocation4 + $0x520] ss:$16 sps:$4 sm:$0xff]   ;;  %v2735_v9 = vld [vmem:[#allocation4 + $0x508] ss:$16 sps:$4 sm:$0xff]  }
  0xba   :  { %1558 = vmatprep.subr.bf16.mxu1 %v2653_v8  ;;  %v2740_v8 = vld [vmem:[#allocation4 + $0x544] ss:$16 sps:$4 sm:$0xff]  }
  0xbc   :  { %1399 = vmatpush1.bf16.msra.mxu0 %v2654_v13  ;;  %v2743_v13 = vld [vmem:[#allocation4 + $0x52c] ss:$16 sps:$4 sm:$0xff]  }
  0xbd   :  { %1559 = vmatpush1.bf16.msra.mxu1 %v2651_v11  ;;  %1400 = vmatprep.subr.bf16.mxu0 %v2662_v15  ;;  %v2738_v11 = vld [vmem:[#allocation4 + $0x540] ss:$16 sps:$4 sm:$0xff]   ;;  %v2741_v15 = vld [vmem:[#allocation4 + $0x528] ss:$16 sps:$4 sm:$0xff]  }
  0xbe   :  { %1560 = vmatprep.subr.bf16.mxu1 %v2659_v14  ;;  %v2746_v14 = vld [vmem:[#allocation4 + $0x564] ss:$16 sps:$4 sm:$0xff]  }
  0xc0   :  { %1401 = vmatpush1.bf16.msra.mxu0 %v2660_v18  ;;  %v2749_v18 = vld [vmem:[#allocation4 + $0x54c] ss:$16 sps:$4 sm:$0xff]  }
  0xc1   :  { %1561 = vmatpush1.bf16.msra.mxu1 %v2657_v17  ;;  %1402 = vmatprep.subr.bf16.mxu0 %v2668_v21  ;;  %v2744_v17 = vld [vmem:[#allocation4 + $0x560] ss:$16 sps:$4 sm:$0xff]   ;;  %v2747_v21 = vld [vmem:[#allocation4 + $0x548] ss:$16 sps:$4 sm:$0xff]  }
  0xc2   :  { %1562 = vmatprep.subr.bf16.mxu1 %v2665_v19  ;;  %v2752_v19 = vld [vmem:[#allocation4 + $0x584] ss:$16 sps:$4 sm:$0xff]  }
  0xc4   :  { %1403 = vmatpush1.bf16.msra.mxu0 %v2666_v23  ;;  %v2755_v23 = vld [vmem:[#allocation4 + $0x56c] ss:$16 sps:$4 sm:$0xff]  }
  0xc5   :  { %1563 = vmatpush1.bf16.msra.mxu1 %v2663_v22  ;;  %1404 = vmatprep.subr.bf16.mxu0 %v2674_v26  ;;  %v2750_v22 = vld [vmem:[#allocation4 + $0x580] ss:$16 sps:$4 sm:$0xff]   ;;  %v2753_v26 = vld [vmem:[#allocation4 + $0x568] ss:$16 sps:$4 sm:$0xff]  }
  0xc6   :  { %1564 = vmatprep.subr.bf16.mxu1 %v2671_v24  ;;  %v2758_v24 = vld [vmem:[#allocation4 + $0x5a4] ss:$16 sps:$4 sm:$0xff]  }
  0xc8   :  { %1405 = vmatpush1.bf16.msra.mxu0 %v2672_v28  ;;  %v2761_v28 = vld [vmem:[#allocation4 + $0x58c] ss:$16 sps:$4 sm:$0xff]  }
  0xc9   :  { %1565 = vmatpush1.bf16.msra.mxu1 %v2669_v27  ;;  %1415 = vmatprep.subr.bf16.mxu0 %v2680_v30  ;;  %v2756_v27 = vld [vmem:[#allocation4 + $0x5a0] ss:$16 sps:$4 sm:$0xff]   ;;  %v2759_v30 = vld [vmem:[#allocation4 + $0x588] ss:$16 sps:$4 sm:$0xff]  }
  0xca   :  { %1566 = vmatprep.subr.bf16.mxu1 %v2677_v29  ;;  %v2764_v29 = vld [vmem:[#allocation4 + $0x5c4] ss:$16 sps:$4 sm:$0xff]  }
  0xcb   :  { %1407 = vmatmul.mubr.bf16.vlgmr.msra.gmra.mrb[0].mxu0 %v126_v33 }
  0xcc   :  { %1416 = vmatpush1.bf16.msra.mxu0 %v2678_v10  ;;  %1447 = vmatprep.mubr.bf16.mxu0 %v129_v35  ;;  %v2765_v10 = vld [vmem:[#allocation4 + $0x5a8] ss:$16 sps:$4 sm:$0xff]  }
  0xcd   :  { %1567 = vmatpush1.bf16.msra.mxu1 %v2675_v32  ;;  %1417 = vmatprep.subr.bf16.mxu0 %v2686_v34  ;;  %v2767_v32 = vld [vmem:[#allocation4 + $0x5ac] ss:$16 sps:$4 sm:$0xff]  }
  0xce   :  { %1568 = vmatprep.subr.bf16.mxu1 %v2683_v12  ;;  %v2768_v12 = vld [vmem:[#allocation4 + $0x5e0] ss:$16 sps:$4 sm:$0xff]   ;;  %v2773_v34 = vld [vmem:[#allocation4 + $0x5cc] ss:$16 sps:$4 sm:$0xff]  }
  0xd0   :  { %1418 = vmatpush1.bf16.msra.mxu0 %v2684_v37  ;;  %v128_v37 = vpack.c.bf16 %v3037_v25, %v3037_v25  ;;  %v2785_v25 = vld [vmem:[#allocation6 + $0x10] sm:$0xff]  }
  0xd1   :  { %1569 = vmatpush1.bf16.msra.mxu1 %v2681_v36  ;;  %1419 = vmatprep.subr.bf16.mxu0 %v2692_v39  ;;  %v2771_v36 = vld [vmem:[#allocation4 + $0x5c8] ss:$16 sps:$4 sm:$0xff]   ;;  %v2781_v39 = vld [vmem:[#allocation6] sm:$0xff]  }
  0xd2   :  { %1579 = vmatprep.subr.bf16.mxu1 %v2689_v38  ;;  %v2776_v38 = vld [vmem:[#allocation4 + $0x5ec] ss:$16 sps:$4 sm:$0xff]  }
  0xd4   :  { %1571 = vmatmul.mubr.bf16.vlgmr.msra.gmra.mrb[4].mxu1 %v126_v33  ;;  %1420 = vmatpush1.bf16.msra.mxu0 %v2690_v16  ;;  %v2770_v33 = vld [vmem:[#allocation4 + $0x5e4] ss:$16 sps:$4 sm:$0xff]   ;;  %v2774_v16 = vld [vmem:[#allocation4 + $0x5e8] ss:$16 sps:$4 sm:$0xff]  }
  0xd5   :  { %1580 = vmatpush1.bf16.msra.mxu1 %v2687_v40  ;;  %1611 = vmatprep.mubr.bf16.mxu1 %v129_v35  ;;  %v2780_v35 = vld [vmem:[#allocation6 + $0x40] sm:$0xff]   ;;  %v2782_v40 = vld [vmem:[#allocation6 + $0x48] sm:$0xff]  }
  0xd6   :  { %1581 = vmatprep.subr.bf16.mxu1 %v2695_v41  ;;  %1421 = vmatprep.subr.bf16.mxu0 %v2698_v42  ;;  %v2779_v41 = vld [vmem:[#allocation4 + $0x60c] ss:$16 sps:$4 sm:$0xff]  }
  0xd7   :  { %v2783_v42 = vld [vmem:[#allocation6 + $0x8] sm:$0xff]  }
  0xd8   :  { %1422 = vmatpush1.bf16.msra.mxu0 %v2696_v44  ;;  %v2777_v44 = vld [vmem:[#allocation4 + $0x608] ss:$16 sps:$4 sm:$0xff]  }
  0xd9   :  { %1582 = vmatpush1.bf16.msra.mxu1 %v2693_v43  ;;  %1423 = vmatprep.subr.bf16.mxu0 %v2704_v46  ;;  %v2784_v43 = vld [vmem:[#allocation6 + $0x50] sm:$0xff]   ;;  %v2786_v46 = vld [vmem:[#allocation6 + $0x58] sm:$0xff]  }
  0xda   :  { %1583 = vmatprep.subr.bf16.mxu1 %v2701_v45  ;;  %v2788_v45 = vld [vmem:[#allocation6 + $0xc0] sm:$0xff]  }
  0xdc   :  { %1424 = vmatpush1.bf16.msra.mxu0 %v2702_v48  ;;  %v2790_v48 = vld [vmem:[#allocation6 + $0x60] sm:$0xff]  }
  0xdd   :  { %1584 = vmatpush1.bf16.msra.mxu1 %v2699_v47  ;;  %1425 = vmatprep.subr.bf16.mxu0 %v2710_v51  ;;  %v2787_v47 = vld [vmem:[#allocation6 + $0x18] sm:$0xff]   ;;  %v2789_v51 = vld [vmem:[#allocation6 + $0x80] sm:$0xff]  }
  0xde   :  { %1585 = vmatprep.subr.bf16.mxu1 %v2707_v49  ;;  %v2791_v49 = vld [vmem:[#allocation6 + $0x20] sm:$0xff]  }
  0xe0   :  { %1426 = vmatpush1.bf16.msra.mxu0 %v2708_v52  ;;  %v2792_v52 = vld [vmem:[#allocation6 + $0xc8] sm:$0xff]  }
  0xe1   :  { %1586 = vmatpush1.bf16.msra.mxu1 %v2705_v50  ;;  %1427 = vmatprep.subr.bf16.mxu0 %v2716_v54  ;;  %v2794_v50 = vld [vmem:[#allocation6 + $0x68] sm:$0xff]  }
  0xe2   :  { %1587 = vmatprep.subr.bf16.mxu1 %v2713_v53  ;;  %v2793_v53 = vld [vmem:[#allocation6 + $0x88] sm:$0xff]  }
  0xe4   :  { %1428 = vmatpush1.bf16.msra.mxu0 %v2714_v56 }
  0xe5   :  { %1588 = vmatpush1.bf16.msra.mxu1 %v2711_v55  ;;  %1429 = vmatprep.subr.bf16.mxu0 %v2722_v58  ;;  %v2796_v58 = vld [vmem:[#allocation6 + $0xd0] sm:$0xff]  }
  0xe6   :  { %1589 = vmatprep.subr.bf16.mxu1 %v2719_v57  ;;  %v2795_v57 = vld [vmem:[#allocation6 + $0x28] sm:$0xff]  }
  0xe8   :  { %1430 = vmatpush1.bf16.msra.mxu0 %v2720_v60  ;;  %v2798_v60 = vld [vmem:[#allocation6 + $0x70] sm:$0xff]  }
  0xe9   :  { %1590 = vmatpush1.bf16.msra.mxu1 %v2717_v59  ;;  %1431 = vmatprep.subr.bf16.mxu0 %v2728_v62  ;;  %v2797_v59 = vld [vmem:[#allocation6 + $0x90] sm:$0xff]   ;;  %v2800_v62 = vld [vmem:[#allocation6 + $0xd8] sm:$0xff]  }
  0xea   :  { %1591 = vmatprep.subr.bf16.mxu1 %v2725_v61  ;;  %v2799_v61 = vld [vmem:[#allocation6 + $0x30] sm:$0xff]  }
  0xec   :  { %1432 = vmatpush1.bf16.msra.mxu0 %v2726_v1  ;;  %v2803_v1 = vld [vmem:[#allocation6 + $0x38] sm:$0xff]  }
  0xed   :  { %1592 = vmatpush1.bf16.msra.mxu1 %v2723_v63  ;;  %1433 = vmatprep.subr.bf16.mxu0 %v2734_v3  ;;  %v2802_v63 = vld [vmem:[#allocation6 + $0x78] sm:$0xff]   ;;  %v2805_v3 = vld [vmem:[#allocation6 + $0xa0] sm:$0xff]  }
  0xee   :  { %1593 = vmatprep.subr.bf16.mxu1 %v2731_v2  ;;  %v2804_v2 = vld [vmem:[#allocation6 + $0xe0] sm:$0xff]  }
  0xf0   :  { %1434 = vmatpush1.bf16.msra.mxu0 %v2732_v6  ;;  %v2807_v6 = vld [vmem:[#allocation6 + $0xa8] sm:$0xff]  }
  0xf1   :  { %1594 = vmatpush1.bf16.msra.mxu1 %v2729_v4  ;;  %1435 = vmatprep.subr.bf16.mxu0 %v2740_v8  ;;  %v2806_v4 = vld [vmem:[#allocation6 + $0xe8] sm:$0xff]   ;;  %v2809_v8 = vld [vmem:[#allocation6 + $0xb0] sm:$0xff]  }
  0xf2   :  { %1595 = vmatprep.subr.bf16.mxu1 %v2737_v7  ;;  %v2808_v7 = vld [vmem:[#allocation6 + $0xf0] sm:$0xff]  }
  0xf4   :  { %1436 = vmatpush1.bf16.msra.mxu0 %v2738_v11  ;;  %v2811_v11 = vld [vmem:[#allocation6 + $0xb8] sm:$0xff]  }
  0xf5   :  { %1596 = vmatpush1.bf16.msra.mxu1 %v2735_v9  ;;  %1437 = vmatprep.subr.bf16.mxu0 %v2746_v14  ;;  %v2810_v9 = vld [vmem:[#allocation6 + $0xf8] sm:$0xff]   ;;  %v331_v14 = vsub.s32 0, %v3015_v5 }
  0xf6   :  { %1597 = vmatprep.subr.bf16.mxu1 %v2743_v13  ;;  %v2924_v13 = vmov 0.0  }
  0xf8   :  { %1438 = vmatpush1.bf16.msra.mxu0 %v2744_v17  ;;  %v335_v17 = vsub.s32 1, %v3015_v5 }
  0xf9   :  { %1598 = vmatpush1.bf16.msra.mxu1 %v2741_v15  ;;  %1439 = vmatprep.subr.bf16.mxu0 %v2752_v19  ;;  %v327_v15 = vld [vmem:[%s3066_s2] sm:$0xf] }
  0xfa   :  { %1599 = vmatprep.subr.bf16.mxu1 %v2749_v18  ;;  %v332_v18 = vrot.slane %v327_v15, %v331_v14  ;;  %v336_v19 = vrot.slane %v327_v15, %v335_v17 }
  0xfc   :  { %1440 = vmatpush1.bf16.msra.mxu0 %v2750_v22 }
  0xfd   :  { %1600 = vmatpush1.bf16.msra.mxu1 %v2747_v21  ;;  %1441 = vmatprep.subr.bf16.mxu0 %v2758_v24 }
  0xfe   :  { %1601 = vmatprep.subr.bf16.mxu1 %v2755_v23 }
 0x100   :  { %1442 = vmatpush1.bf16.msra.mxu0 %v2756_v27 }
 0x101   :  { %1602 = vmatpush1.bf16.msra.mxu1 %v2753_v26  ;;  %1443 = vmatprep.subr.bf16.mxu0 %v2764_v29 }
 0x102   :  { %1603 = vmatprep.subr.bf16.mxu1 %v2761_v28 }
 0x104   :  { %1444 = vmatpush1.bf16.msra.mxu0 %v2762_v31 }
 0x105   :  { %1604 = vmatpush1.bf16.msra.mxu1 %v2759_v30  ;;  %1445 = vmatprep.subr.bf16.mxu0 %v2770_v33  ;;  %v2812_v33 = vld [vmem:[#allocation7] sm:$0xff]  }
 0x106   :  { %1605 = vmatprep.subr.bf16.mxu1 %v2767_v32 }
 0x108   :  { %1446 = vmatpush1.bf16.msra.mxu0 %v2768_v12  ;;  %v339_v12 = vsub.s32 2, %v3015_v5 }
 0x109   :  { %1606 = vmatpush1.bf16.msra.mxu1 %v2765_v10  ;;  %2373 = vmatprep.subr.bf16.mxu0 %v2780_v35  ;;  %v343_v35 = vsub.s32 3, %v3015_v5  ;;  %v2815_v5 = vld [vmem:[#allocation7 + $0x18] sm:$0xff]  }
 0x10a   :  { %1607 = vmatprep.subr.bf16.mxu1 %v2773_v34  ;;  %v2813_v34 = vld [vmem:[#allocation7 + $0x8] sm:$0xff]  }
 0x10b   :  { %1448 = vmatmul.mubr.bf16.vlgmr.msra.gmra.mrb[0].mxu0 %v128_v37 }
 0x10c   :  { %2374 = vmatpush3.bf16.msra.mxu0 %v2781_v39 }
 0x10d   :  { %1608 = vmatpush1.bf16.msra.mxu1 %v2771_v36  ;;  %2375 = vmatprep.subr.bf16.mxu0 %v2782_v40  ;;  %v340_v36 = vrot.slane %v327_v15, %v339_v12 }
 0x10e   :  { %1609 = vmatprep.subr.bf16.mxu1 %v2776_v38 }
 0x110   :  { %2376 = vmatpush3.bf16.msra.mxu0 %v2783_v42 }
 0x111   :  { %1610 = vmatpush1.bf16.msra.mxu1 %v2774_v16  ;;  %2377 = vmatprep.subr.bf16.mxu0 %v2784_v43 }
 0x112   :  { %1620 = vmatprep.subr.bf16.mxu1 %v2779_v41 }
 0x114   :  { %1612 = vmatmul.mubr.bf16.vlgmr.msra.gmra.mrb[4].mxu1 %v128_v37  ;;  %2378 = vmatpush3.bf16.msra.mxu0 %v2785_v25  ;;  %v344_v37 = vrot.slane %v327_v15, %v343_v35 }
 0x115   :  { %1621 = vmatpush1.bf16.msra.mxu1 %v2777_v44  ;;  %1652 = vmatprep.mubr.bf16.mxu1 %v2922_v0 }
 0x116   :  { %2395 = vmatprep.subr.bf16.mxu1 %v2788_v45  ;;  %2379 = vmatprep.subr.bf16.mxu0 %v2786_v46  ;;  %v2814_v46 = vld [vmem:[#allocation7 + $0x10] sm:$0xff]  }
 0x118   :  { %2380 = vmatpush3.bf16.msra.mxu0 %v2787_v47  ;;  %v2816_v47 = vld [vmem:[#allocation7 + $0x20] sm:$0xff]  }
 0x119   :  { %2381 = vmatprep.subr.bf16.mxu0 %v2790_v48  ;;  %v2817_v48 = vld [vmem:[#allocation7 + $0x28] sm:$0xff]  }
 0x11c   :  { %2382 = vmatpush3.bf16.msra.mxu0 %v2791_v49  ;;  %v2818_v49 = vld [vmem:[#allocation7 + $0x30] sm:$0xff]  }
 0x11d   :  { %2383 = vmatprep.subr.bf16.mxu0 %v2794_v50  ;;  %v2819_v50 = vld [vmem:[#allocation7 + $0x38] sm:$0xff]  }
 0x120   :  { %2330 = vmatmul.mubr.msk.bf16.vlgmr.msra.gmra.mrb[4].mxu1 %vm1329_vm0, %v3025_v20  ;;  %2384 = vmatpush3.bf16.msra.mxu0 %v2795_v57  ;;  %v2801_v20 = vld [vmem:[#allocation6 + $0x98] sm:$0xff]  }
 0x121   :  { %2396 = vmatpush3.bf16.msra.mxu1 %v2789_v51  ;;  %2385 = vmatprep.subr.bf16.mxu0 %v2798_v60 }
 0x122   :  { %2397 = vmatprep.subr.bf16.mxu1 %v2792_v52 }
 0x124   :  { %2386 = vmatpush3.bf16.msra.mxu0 %v2799_v61 }
 0x125   :  { %2398 = vmatpush3.bf16.msra.mxu1 %v2793_v53  ;;  %2387 = vmatprep.subr.bf16.mxu0 %v2802_v63 }
 0x126   :  { %2399 = vmatprep.subr.bf16.mxu1 %v2796_v58 }
 0x127   :  { %v1490_v0 = vpop.f32.mrb[0].mxu1 }
 0x128   :  { %v1492_v54 = vpop.f32.mrb[1].mxu1  ;;  %2388 = vmatpush3.bf16.msra.mxu0 %v2803_v1  ;;  %v2364_v1 = vld [vmem:[%s3070_s6] ss:$0 sm:$0xff] }
 0x129   :  { %v1494_v55 = vpop.f32.mrb[2].mxu1  ;;  %2400 = vmatpush3.bf16.msra.mxu1 %v2797_v59  ;;  %2426 = vmatprep.subr.bf16.mxu0 %v2924_v13 }
 0x12a   :  { %v1495_v56 = vpop.f32.mrb[3].mxu1  ;;  %2401 = vmatprep.subr.bf16.mxu1 %v2800_v62  ;;  %v2331_v55 = vld [vmem:[%s3068_s4] ss:$0 sm:$0xff] }
 0x12d   :  { %2402 = vmatpush3.bf16.msra.mxu1 %v2801_v20 }
 0x12e   :  { %2403 = vmatprep.subr.bf16.mxu1 %v2804_v2 }
 0x131   :  { %2404 = vmatpush3.bf16.msra.mxu1 %v2805_v3 }
 0x132   :  { %2405 = vmatprep.subr.bf16.mxu1 %v2806_v4 }
 0x135   :  { %2406 = vmatpush3.bf16.msra.mxu1 %v2807_v6 }
 0x136   :  { %2407 = vmatprep.subr.bf16.mxu1 %v2808_v7 }
 0x139   :  { %2408 = vmatpush3.bf16.msra.mxu1 %v2809_v8 }
 0x13a   :  { %2409 = vmatprep.subr.bf16.mxu1 %v2810_v9 }
 0x13d   :  { %2410 = vmatpush3.bf16.msra.mxu1 %v2811_v11 }
 0x1de   :  { %v1449_v21 = vpop.f32.mrb[0].mxu0 }
 0x1df   :  { %v2446_v22 = vadd.f32 %v1449_v21, %v332_v18  ;;  %v1451_v23 = vpop.f32.mrb[1].mxu0 }
 0x1e0   :  { %v2448_v24 = vadd.f32 %v1451_v23, %v336_v19  ;;  %v1453_v26 = vpop.f32.mrb[2].mxu0 }
 0x1e1   :  { %v2447_v27 = vadd.f32 %v2446_v22, %v1490_v0  ;;  %v1454_v28 = vpop.f32.mrb[3].mxu0 }
 0x1e2   :  { %v2449_v29 = vadd.f32 %v2448_v24, %v1492_v54 }
 0x1e3   :  { %v1661_v30 = vmax.f32 %v2447_v27, 0.0 }
 0x1e4   :  { %v1662_v31 = vmax.f32 %v2449_v29, 0.0 }
 0x1e5   :  { %v1665_v10 = vpack.c.bf16 %v1661_v30, %v1661_v30 }
 0x1e6   :  { %v1666_v32 = vpack.c.bf16 %v1662_v31, %v1662_v31 }
 0x1e8   :  { %1964 = vmatprep.mubr.bf16.mxu0 %v1666_v32 }
 0x1e9   :  { %1965 = vmatmul.mubr.bf16.vlgmr.msra.gmra.mrb[4].mxu0 %v1665_v10 }
 0x1ea   :  { %2427 = vmatpush3.bf16.msra.mxu0 %v2812_v33  ;;  %2442 = vmatprep.mubr.msk.bf16.mxu0 %vm2925_vm1, %v2924_v13 }
 0x1eb   :  { %2428 = vmatprep.subr.bf16.mxu0 %v2924_v13 }
 0x1ee   :  { %2429 = vmatpush3.bf16.msra.mxu0 %v2813_v34 }
 0x1ef   :  { %2430 = vmatprep.subr.bf16.mxu0 %v2924_v13 }
 0x1f2   :  { %2431 = vmatpush3.bf16.msra.mxu0 %v2814_v46 }
 0x1f3   :  { %v1654_v38 = vpop.f32.mrb[4].mxu1  ;;  %2432 = vmatprep.subr.bf16.mxu0 %v2924_v13 }
 0x1f4   :  { %v2450_v39 = vadd.f32 %v1654_v38, %v340_v36  ;;  %v1656_v40 = vpop.f32.mrb[5].mxu1 }
 0x1f5   :  { %v2451_v16 = vadd.f32 %v1656_v40, %v344_v37  ;;  %v1658_v41 = vpop.f32.mrb[6].mxu1 }
 0x1f6   :  { %v1663_v42 = vmax.f32 %v2450_v39, 0.0  ;;  %v1659_v43 = vpop.f32.mrb[7].mxu1  ;;  %2433 = vmatpush3.bf16.msra.mxu0 %v2815_v5 }
 0x1f7   :  { %v1664_v44 = vmax.f32 %v2451_v16, 0.0  ;;  %2434 = vmatprep.subr.bf16.mxu0 %v2924_v13 }
 0x1f8   :  { %v1667_v45 = vpack.c.bf16 %v1663_v42, %v1663_v42 }
 0x1f9   :  { %v1668_v25 = vpack.c.bf16 %v1664_v44, %v1664_v44 }
 0x1fa   :  { %2435 = vmatpush3.bf16.msra.mxu0 %v2816_v47 }
 0x1fb   :  { %2004 = vmatprep.mubr.bf16.mxu1 %v1668_v25  ;;  %2436 = vmatprep.subr.bf16.mxu0 %v2924_v13 }
 0x1fc   :  { %2005 = vmatmul.mubr.bf16.vlgmr.msra.gmra.mrb[8].mxu1 %v1667_v45 }
 0x1fe   :  { %2437 = vmatpush3.bf16.msra.mxu0 %v2817_v48 }
 0x1ff   :  { %2438 = vmatprep.subr.bf16.mxu0 %v2924_v13 }
 0x202   :  { %2439 = vmatpush3.bf16.msra.mxu0 %v2818_v49 }
 0x203   :  { %2440 = vmatprep.subr.bf16.mxu0 %v2924_v13 }
 0x206   :  { %2441 = vmatpush3.bf16.msra.mxu0 %v2819_v50 }
 0x2bc   :  { %v2389_v51 = vpop.f32.mrb[4].mxu0 }
 0x2bd   :  { %v2390_v52 = vpop.f32.mrb[5].mxu0 }
 0x2be   :  { %v2391_v53 = vadd.f32 %v2390_v52, %v2389_v51  ;;  %v2392_v0 = vpop.f32.mrb[6].mxu0 }
 0x2bf   :  { %v2393_v54 = vpop.f32.mrb[7].mxu0 }
 0x2c0   :  { %v1967_v58 = vadd.f32 %v2391_v53, %v2331_v55 }
 0x2cf   :  { %v2411_v56 = vpop.f32.mrb[8].mxu1 }
 0x2d0   :  { %v2412_v57 = vpop.f32.mrb[9].mxu1 }
 0x2d1   :  { %v2413_v59 = vadd.f32 %v2412_v57, %v2411_v56  ;;  %v2414_v60 = vpop.f32.mrb[10].mxu1 }
 0x2d2   :  { %v2415_v61 = vpop.f32.mrb[11].mxu1 }
 0x2d3   :  { %v2007_v62 = vadd.f32 %v2413_v59, %v1967_v58 }
 0x2d5   :  { %v2012_v20 = vmax.f32 %v2007_v62, 0.0 }
 0x2d7   :  { %v2013_v63 = vpack.c.bf16 %v2012_v20, %v2012_v20 }
 0x2d9   :  { %2443 = vmatmul.mubr.bf16.vlgmr.msra.gmra.mrb[8].mxu0 %v2013_v63 }
 0x3ac   :  { %v2119_v2 = vpop.f32.mrb[8].mxu0 }
 0x3ad   :  { %v2120_v3 = vadd.f32 %v2364_v1, %v2119_v2  ;;  %v2444_v4 = vpop.f32.mrb[9].mxu0 }
 0x3ae   :  { %v2122_v6 = vpop.f32.mrb[10].mxu0 }
 0x3af   :  { %2125 = vst [vmem:[%s3071_s7] sm:$0x3] %v2120_v3  ;;  %v2445_v7 = vpop.f32.mrb[11].mxu0 }
 0x3b0   :  { %2130 = vsyncpa [#allocation3], 1 }
 0x3b1   :  { %2131 = vsyncpa [#allocation5], 1 }
 0x3b2   :  { %2132 = vsyncpa [#allocation8], 1 }

</bundles_post_ra>
